<compile_context>
chip_gen: v6e
topology: v6e:2x2x1
jax: 0.10.0
libtpu: 0.0.40
codegen_flags: <defaults>
</compile_context>

<pallas_src>
import functools

import jax
import jax.numpy as jnp
from jax import lax
from jax.experimental import pallas as pl
from jax.experimental.pallas import tpu as pltpu


# ---------------------------------------------------------------------------
# Parameter construction (deterministic, mirrors the PyTorch __init__)
# ---------------------------------------------------------------------------
def make_pe_table(seq_length: int, d_model: int, dtype=jnp.float32):
    assert d_model % 2 == 0
    pos = jnp.linspace(0.0, seq_length - 1, seq_length)[:, None]   # (S, 1)
    i = jnp.arange(0, d_model // 2, dtype=jnp.float32)[None, :]    # (1, D/2)
    angle = pos / (10000.0 ** (2.0 * i / d_model))
    pe_sin = jnp.sin(angle)
    pe_cos = jnp.cos(angle)
    # stack on axis=2 then reshape -> interleaved [sin0, cos0, sin1, cos1, ...]
    pe = jnp.stack((pe_sin, pe_cos), axis=2).reshape(seq_length, d_model)
    return pe.astype(dtype)


# ---------------------------------------------------------------------------
# Pallas kernel: table-resident embedding row gather
# ---------------------------------------------------------------------------
def _gather_kernel(t_sm, pe_ref, out_ref):
    # t_sm:    (B_pad,) int32 indices in SMEM (scalar prefetch)
    # pe_ref:  (S, 1, D) PE table, resident in VMEM (same block every step)
    # out_ref: (TB, 1, D) output rows for this batch tile
    tile = pl.program_id(0)
    TB = out_ref.shape[0]
    S = pe_ref.shape[0]

    def body(j, carry):
        idx = t_sm[tile * TB + j]
        # Clamp: VMEM accesses have no runtime bounds check.
        idx = jnp.minimum(jnp.maximum(idx, 0), S - 1)
        # Pure leading-axis dynamic addressing: copy one (1, 1, D) row.
        out_ref[pl.ds(j, 1)] = pe_ref[pl.ds(idx, 1)]
        return carry

    lax.fori_loop(0, TB, body, 0, unroll=(TB <= 32))


@functools.partial(jax.jit, static_argnames=("block_rows",))
def positional_encoding_lookup(t: jax.Array, pe: jax.Array,
                               block_rows: int = 8) -> jax.Array:
    """out[i, :] = pe[t[i], :]   (== nn.Embedding with weight `pe`)."""
    assert t.ndim == 1
    B = t.shape[0]
    S, D = pe.shape

    TB = block_rows
    n_tiles = pl.cdiv(B, TB)
    B_pad = TB * n_tiles

    t_pad = jnp.zeros((B_pad,), jnp.int32).at[:B].set(t.astype(jnp.int32))
    pe3 = pe.reshape(S, 1, D)   # each row is its own lane-aligned tile

    grid_spec = pltpu.PrefetchScalarGridSpec(
        num_scalar_prefetch=1,                       # t lands in SMEM
        grid=(n_tiles,),
        in_specs=[
            # Whole table, constant block index -> fetched once, kept resident.
            pl.BlockSpec((S, 1, D), lambda i, t_sm: (0, 0, 0)),
        ],
        out_specs=pl.BlockSpec((TB, 1, D), lambda i, t_sm: (i, 0, 0)),
    )

    out = pl.pallas_call(
        _gather_kernel,
        grid_spec=grid_spec,
        out_shape=jax.ShapeDtypeStruct((B_pad, 1, D), pe.dtype),
        compiler_params=pltpu.CompilerParams(
            dimension_semantics=("parallel",)),      # v7x: split across 2 TCs
    )(t_pad, pe3)

    return out.reshape(B_pad, D)[:B]


# ---------------------------------------------------------------------------
# Demo / self-check
# ---------------------------------------------------------------------------
if __name__ == "__main__":
    seq_length = 16    # number of timesteps the table covers
    d_model = 128      # embedding width (even; lane-dense output)
    batch = 8          # number of timestep indices looked up

    pe = make_pe_table(seq_length, d_model)          # (16, 128) float32

    key = jax.random.PRNGKey(0)
    t = jax.random.randint(key, (batch,), 0, seq_length, dtype=jnp.int32)

    out = positional_encoding_lookup(t, pe)
    out = jax.block_until_ready(out)

    # Reference: plain gather (what nn.Embedding does).
    ref = pe[t]
    assert out.shape == (batch, d_model)
    assert out.dtype == jnp.float32
    assert jnp.array_equal(out, ref)

    print("KERNEL_OK")
</pallas_src>

<mosaic_0001>
module attributes {stable_mosaic.version = 11 : i64} {
  func.func @_gather_kernel(%arg0: i32, %arg1: memref<8xi32, #tpu.memory_space<smem>>, %arg2: memref<16x1x128xf32, #tpu.memory_space<vmem>>, %arg3: memref<8x1x128xf32, #tpu.memory_space<vmem>>) attributes {dimension_semantics = [#tpu.dimension_semantics<parallel>], iteration_bounds = array<i64: 1>, scalar_prefetch = 1 : i64, scratch_operands = 0 : i64, tpu.core_type = #tpu.core_type<tc>, window_params = [{pipeline_mode = #tpu.pipeline_mode<synchronous>, transform_indices = @transform_0, window_bounds = array<i64: 16, 1, 128>}, {transform_indices = @transform_1, window_bounds = array<i64: 8, 1, 128>}]} {
    %c0_i32 = arith.constant 0 : i32
    %c8_i32 = arith.constant 8 : i32
    %0 = arith.muli %arg0, %c8_i32 : i32
    %1 = arith.addi %0, %c0_i32 : i32
    %2 = arith.index_cast %1 : i32 to index
    %3 = memref.load %arg1[%2] : memref<8xi32, #tpu.memory_space<smem>>
    %c0_i32_0 = arith.constant 0 : i32
    %4 = arith.maxsi %3, %c0_i32_0 : i32
    %c15_i32 = arith.constant 15 : i32
    %5 = arith.minsi %4, %c15_i32 : i32
    %6 = arith.index_cast %5 : i32 to index
    %c0 = arith.constant 0 : index
    %c0_1 = arith.constant 0 : index
    %7 = vector.load %arg2[%6, %c0, %c0_1] : memref<16x1x128xf32, #tpu.memory_space<vmem>>, vector<1x1x128xf32>
    %8 = arith.index_cast %c0_i32 : i32 to index
    %c0_2 = arith.constant 0 : index
    %c0_3 = arith.constant 0 : index
    %9 = vector.load %arg3[%8, %c0_2, %c0_3] : memref<8x1x128xf32, #tpu.memory_space<vmem>>, vector<1x1x128xf32>
    tpu.vector_store %arg3[%8, %c0_2, %c0_3], %7 {strides = array<i32>} : memref<8x1x128xf32, #tpu.memory_space<vmem>>, vector<1x1x128xf32>,
    %c1_i32 = arith.constant 1 : i32
    %c8_i32_4 = arith.constant 8 : i32
    %10 = arith.muli %arg0, %c8_i32_4 : i32
    %11 = arith.addi %10, %c1_i32 : i32
    %12 = arith.index_cast %11 : i32 to index
    %13 = memref.load %arg1[%12] : memref<8xi32, #tpu.memory_space<smem>>
    %c0_i32_5 = arith.constant 0 : i32
    %14 = arith.maxsi %13, %c0_i32_5 : i32
    %c15_i32_6 = arith.constant 15 : i32
    %15 = arith.minsi %14, %c15_i32_6 : i32
    %16 = arith.index_cast %15 : i32 to index
    %c0_7 = arith.constant 0 : index
    %c0_8 = arith.constant 0 : index
    %17 = vector.load %arg2[%16, %c0_7, %c0_8] : memref<16x1x128xf32, #tpu.memory_space<vmem>>, vector<1x1x128xf32>
    %18 = arith.index_cast %c1_i32 : i32 to index
    %c0_9 = arith.constant 0 : index
    %c0_10 = arith.constant 0 : index
    %19 = vector.load %arg3[%18, %c0_9, %c0_10] : memref<8x1x128xf32, #tpu.memory_space<vmem>>, vector<1x1x128xf32>
    tpu.vector_store %arg3[%18, %c0_9, %c0_10], %17 {strides = array<i32>} : memref<8x1x128xf32, #tpu.memory_space<vmem>>, vector<1x1x128xf32>,
    %c2_i32 = arith.constant 2 : i32
    %c8_i32_11 = arith.constant 8 : i32
    %20 = arith.muli %arg0, %c8_i32_11 : i32
    %21 = arith.addi %20, %c2_i32 : i32
    %22 = arith.index_cast %21 : i32 to index
    %23 = memref.load %arg1[%22] : memref<8xi32, #tpu.memory_space<smem>>
    %c0_i32_12 = arith.constant 0 : i32
    %24 = arith.maxsi %23, %c0_i32_12 : i32
    %c15_i32_13 = arith.constant 15 : i32
    %25 = arith.minsi %24, %c15_i32_13 : i32
    %26 = arith.index_cast %25 : i32 to index
    %c0_14 = arith.constant 0 : index
    %c0_15 = arith.constant 0 : index
    %27 = vector.load %arg2[%26, %c0_14, %c0_15] : memref<16x1x128xf32, #tpu.memory_space<vmem>>, vector<1x1x128xf32>
    %28 = arith.index_cast %c2_i32 : i32 to index
    %c0_16 = arith.constant 0 : index
    %c0_17 = arith.constant 0 : index
    %29 = vector.load %arg3[%28, %c0_16, %c0_17] : memref<8x1x128xf32, #tpu.memory_space<vmem>>, vector<1x1x128xf32>
    tpu.vector_store %arg3[%28, %c0_16, %c0_17], %27 {strides = array<i32>} : memref<8x1x128xf32, #tpu.memory_space<vmem>>, vector<1x1x128xf32>,
    %c3_i32 = arith.constant 3 : i32
    %c8_i32_18 = arith.constant 8 : i32
    %30 = arith.muli %arg0, %c8_i32_18 : i32
    %31 = arith.addi %30, %c3_i32 : i32
    %32 = arith.index_cast %31 : i32 to index
    %33 = memref.load %arg1[%32] : memref<8xi32, #tpu.memory_space<smem>>
    %c0_i32_19 = arith.constant 0 : i32
    %34 = arith.maxsi %33, %c0_i32_19 : i32
    %c15_i32_20 = arith.constant 15 : i32
    %35 = arith.minsi %34, %c15_i32_20 : i32
    %36 = arith.index_cast %35 : i32 to index
    %c0_21 = arith.constant 0 : index
    %c0_22 = arith.constant 0 : index
    %37 = vector.load %arg2[%36, %c0_21, %c0_22] : memref<16x1x128xf32, #tpu.memory_space<vmem>>, vector<1x1x128xf32>
    %38 = arith.index_cast %c3_i32 : i32 to index
    %c0_23 = arith.constant 0 : index
    %c0_24 = arith.constant 0 : index
    %39 = vector.load %arg3[%38, %c0_23, %c0_24] : memref<8x1x128xf32, #tpu.memory_space<vmem>>, vector<1x1x128xf32>
    tpu.vector_store %arg3[%38, %c0_23, %c0_24], %37 {strides = array<i32>} : memref<8x1x128xf32, #tpu.memory_space<vmem>>, vector<1x1x128xf32>,
    %c4_i32 = arith.constant 4 : i32
    %c8_i32_25 = arith.constant 8 : i32
    %40 = arith.muli %arg0, %c8_i32_25 : i32
    %41 = arith.addi %40, %c4_i32 : i32
    %42 = arith.index_cast %41 : i32 to index
    %43 = memref.load %arg1[%42] : memref<8xi32, #tpu.memory_space<smem>>
    %c0_i32_26 = arith.constant 0 : i32
    %44 = arith.maxsi %43, %c0_i32_26 : i32
    %c15_i32_27 = arith.constant 15 : i32
    %45 = arith.minsi %44, %c15_i32_27 : i32
    %46 = arith.index_cast %45 : i32 to index
    %c0_28 = arith.constant 0 : index
    %c0_29 = arith.constant 0 : index
    %47 = vector.load %arg2[%46, %c0_28, %c0_29] : memref<16x1x128xf32, #tpu.memory_space<vmem>>, vector<1x1x128xf32>
    %48 = arith.index_cast %c4_i32 : i32 to index
    %c0_30 = arith.constant 0 : index
    %c0_31 = arith.constant 0 : index
    %49 = vector.load %arg3[%48, %c0_30, %c0_31] : memref<8x1x128xf32, #tpu.memory_space<vmem>>, vector<1x1x128xf32>
    tpu.vector_store %arg3[%48, %c0_30, %c0_31], %47 {strides = array<i32>} : memref<8x1x128xf32, #tpu.memory_space<vmem>>, vector<1x1x128xf32>,
    %c5_i32 = arith.constant 5 : i32
    %c8_i32_32 = arith.constant 8 : i32
    %50 = arith.muli %arg0, %c8_i32_32 : i32
    %51 = arith.addi %50, %c5_i32 : i32
    %52 = arith.index_cast %51 : i32 to index
    %53 = memref.load %arg1[%52] : memref<8xi32, #tpu.memory_space<smem>>
    %c0_i32_33 = arith.constant 0 : i32
    %54 = arith.maxsi %53, %c0_i32_33 : i32
    %c15_i32_34 = arith.constant 15 : i32
    %55 = arith.minsi %54, %c15_i32_34 : i32
    %56 = arith.index_cast %55 : i32 to index
    %c0_35 = arith.constant 0 : index
    %c0_36 = arith.constant 0 : index
    %57 = vector.load %arg2[%56, %c0_35, %c0_36] : memref<16x1x128xf32, #tpu.memory_space<vmem>>, vector<1x1x128xf32>
    %58 = arith.index_cast %c5_i32 : i32 to index
    %c0_37 = arith.constant 0 : index
    %c0_38 = arith.constant 0 : index
    %59 = vector.load %arg3[%58, %c0_37, %c0_38] : memref<8x1x128xf32, #tpu.memory_space<vmem>>, vector<1x1x128xf32>
    tpu.vector_store %arg3[%58, %c0_37, %c0_38], %57 {strides = array<i32>} : memref<8x1x128xf32, #tpu.memory_space<vmem>>, vector<1x1x128xf32>,
    %c6_i32 = arith.constant 6 : i32
    %c8_i32_39 = arith.constant 8 : i32
    %60 = arith.muli %arg0, %c8_i32_39 : i32
    %61 = arith.addi %60, %c6_i32 : i32
    %62 = arith.index_cast %61 : i32 to index
    %63 = memref.load %arg1[%62] : memref<8xi32, #tpu.memory_space<smem>>
    %c0_i32_40 = arith.constant 0 : i32
    %64 = arith.maxsi %63, %c0_i32_40 : i32
    %c15_i32_41 = arith.constant 15 : i32
    %65 = arith.minsi %64, %c15_i32_41 : i32
    %66 = arith.index_cast %65 : i32 to index
    %c0_42 = arith.constant 0 : index
    %c0_43 = arith.constant 0 : index
    %67 = vector.load %arg2[%66, %c0_42, %c0_43] : memref<16x1x128xf32, #tpu.memory_space<vmem>>, vector<1x1x128xf32>
    %68 = arith.index_cast %c6_i32 : i32 to index
    %c0_44 = arith.constant 0 : index
    %c0_45 = arith.constant 0 : index
    %69 = vector.load %arg3[%68, %c0_44, %c0_45] : memref<8x1x128xf32, #tpu.memory_space<vmem>>, vector<1x1x128xf32>
    tpu.vector_store %arg3[%68, %c0_44, %c0_45], %67 {strides = array<i32>} : memref<8x1x128xf32, #tpu.memory_space<vmem>>, vector<1x1x128xf32>,
    %c7_i32 = arith.constant 7 : i32
    %c8_i32_46 = arith.constant 8 : i32
    %70 = arith.muli %arg0, %c8_i32_46 : i32
    %71 = arith.addi %70, %c7_i32 : i32
    %72 = arith.index_cast %71 : i32 to index
    %73 = memref.load %arg1[%72] : memref<8xi32, #tpu.memory_space<smem>>
    %c0_i32_47 = arith.constant 0 : i32
    %74 = arith.maxsi %73, %c0_i32_47 : i32
    %c15_i32_48 = arith.constant 15 : i32
    %75 = arith.minsi %74, %c15_i32_48 : i32
    %76 = arith.index_cast %75 : i32 to index
    %c0_49 = arith.constant 0 : index
    %c0_50 = arith.constant 0 : index
    %77 = vector.load %arg2[%76, %c0_49, %c0_50] : memref<16x1x128xf32, #tpu.memory_space<vmem>>, vector<1x1x128xf32>
    %78 = arith.index_cast %c7_i32 : i32 to index
    %c0_51 = arith.constant 0 : index
    %c0_52 = arith.constant 0 : index
    %79 = vector.load %arg3[%78, %c0_51, %c0_52] : memref<8x1x128xf32, #tpu.memory_space<vmem>>, vector<1x1x128xf32>
    tpu.vector_store %arg3[%78, %c0_51, %c0_52], %77 {strides = array<i32>} : memref<8x1x128xf32, #tpu.memory_space<vmem>>, vector<1x1x128xf32>,
    %c8_i32_53 = arith.constant 8 : i32
    return
  }
  func.func @transform_0(%arg0: i32, %arg1: memref<8xi32, #tpu.memory_space<smem>>) -> (i32, i32, i32) {
    %c0_i32 = arith.constant 0 : i32
    %c0_i32_0 = arith.constant 0 : i32
    %c0_i32_1 = arith.constant 0 : i32
    %c0_i32_2 = arith.constant 0 : i32
    return %c0_i32, %c0_i32_0, %c0_i32_1 : i32, i32, i32
  }
  func.func @transform_1(%arg0: i32, %arg1: memref<8xi32, #tpu.memory_space<smem>>) -> (i32, i32, i32) {
    %c0_i32 = arith.constant 0 : i32
    %c0_i32_0 = arith.constant 0 : i32
    %c0_i32_1 = arith.constant 0 : i32
    return %arg0, %c0_i32, %c0_i32_0 : i32, i32, i32
  }
}

</mosaic_0001>

<bundles_post_ra>
// kernel: positional_encoding_lookup.1
= control target key start
LH: loop header
LB: loop body
LE: loop exit
PB: predicated region body
PF: predicated region fallthrough
CT: control target
= control target key end

     0   :  { %s305_s0 = inlined_call_operand.vmem [shape: s32[8], index: 0, kind: input, shape index: {}]   ;;  %s306_s1 = inlined_call_operand.hbm [shape: f32[16,1,128], index: 1, kind: input, shape index: {}]   ;;  %s307_s2 = inlined_call_operand.hbm [shape: f32[8,1,128], index: 2, kind: output, shape index: {}]  }
   0x1   :  { %s7_s11 = sshll.u32 %s305_s0, 4  ;;  %s8_s11 = int_to_ptr.vmem [resolvable:$true] %s7_s11 }
   0x2   :  { %s202_s12 = scalar_lea.vmem %s8_s11, 16  ;;  %p207_p1 = scmp.lt.s32.totalorder %s8_s11, %s8_s11 }
   0x3   :  { %p203_p0 = scmp.ne.s32.totalorder %s8_s11, %s202_s12  ;;  %p208_p2 = scmp.lt.s32.totalorder %s202_s12, %s202_s12 }
   0x5   :  { %p209_p3 = por %p208_p2, %p207_p1 }
   0x7   :  { %p210_p4 = pnand %p209_p3, %p203_p0 }
   0x9   :  { %213 = shalt.err (!%p210_p4)  }
   0xa   :  { %s260_s13 = smov [#allocation3]  }
   0xb   :  { %10 = dma.vmem_to_smem %s8_s11, 16, %s260_s13, [#allocation2] }
   0xc   :  { %254 = dma.done.wait [#allocation2], 16 }
   0xd   :  { %255 = vsyncadd [#allocation2], 4294967280 }
   0xe   :  { %12 = sfence }
   0xf   :  { %13 = vsyncpa [#allocation5], 0 }
  0x10   :  { %14 = vsyncpa [#allocation6], 0  ;;  %s261_s14 = smov [#allocation4]  }
  0x11   :  { %s20_s15 = sshll.u32 %s261_s14, 4  ;;  %s21_s15 = int_to_ptr.vmem [resolvable:$true] %s20_s15 }
  0x12   :  { %s222_s16 = scalar_lea.vmem %s21_s15, 256  ;;  %p227_p6 = scmp.lt.s32.totalorder %s21_s15, %s21_s15 }
  0x13   :  { %p223_p5 = scmp.ne.s32.totalorder %s21_s15, %s222_s16  ;;  %p228_p7 = scmp.lt.s32.totalorder %s222_s16, %s222_s16 }
  0x15   :  { %p229_p8 = por %p228_p7, %p227_p6 }
  0x17   :  { %p230_p9 = pnand %p229_p8, %p223_p5 }
  0x19   :  { %233 = shalt.err (!%p230_p9)
}
  0x1a   :  { %s262_s0 = smov 16   ;;  %s263_s17 = smov 1  }
  0x1b   :  { %26 = dma.hbm_to_vmem [thread:$0]  %s306_s1, 256, %s21_s15, [#allocation5], %s262_s0, %s262_s0, %s263_s17  }
  0x1c   :  { %256 = dma.done.wait [#allocation5], 256  }
  0x1d   :  { %257 = vsyncadd [#allocation5], 4294967040  ;;  %s31_s20 = sld [smem:[#allocation3]]  ;;  %s264_s6 = smov [#allocation7]  }
  0x1e   :  { %s139_s21 = sld [smem:[#allocation3 + $0x1]]  ;;  %s114_s7 = sshll.u32 %s264_s6, 4  ;;  %s115_s7 = int_to_ptr.vmem [resolvable:$true] %s114_s7 }
  0x1f   :  { %s145_s22 = sld [smem:[#allocation3 + $0x2]]  ;;  %s234_s10 = scalar_lea.vmem %s115_s7, 128 }
  0x20   :  { %s151_s23 = sld [smem:[#allocation3 + $0x3]] }
  0x21   :  { %s289_s24 = sld [smem:[#allocation3 + $0x4]] }
  0x22   :  { %s291_s25 = sld [smem:[#allocation3 + $0x5]] }
  0x23   :  { %p32_p10 = scmp.gt.s32.totalorder %s31_s20, 0  ;;  %p134_p11 = scmp.lt.s32.totalorder %s31_s20, 15 }
  0x24   :  { %p41_p12 = scmp.gt.s32.totalorder %s139_s21, 0  ;;  %p140_p13 = scmp.lt.s32.totalorder %s139_s21, 15 }
  0x25   :  { %s309_s20 = smov (!%p32_p10, %s31_s20), 0  ;;  %p51_p0 = scmp.gt.s32.totalorder %s145_s22, 0 }
  0x26   :  { %s311_s21 = smov (!%p41_p12, %s139_s21), 0  ;;  %s313_s20 = smov (!%p134_p11, %s309_s20), 15 }
  0x27   :  { %s315_s21 = smov (!%p140_p13, %s311_s21), 15  ;;  %s36_s1 = scalar_lea.vmem [#allocation4], %s313_s20 }
  0x28   :  { %v37_v0 = vld [vmem:[%s36_s1] sm:$0x1]  ;;  %p146_p1 = scmp.lt.s32.totalorder %s145_s22, 15  ;;  %s45_s26 = scalar_lea.vmem [#allocation4], %s315_s21 }
  0x29   :  { %38 = vst [vmem:[#allocation7] sm:$0x1] %v37_v0  ;;  %v46_v1 = vld [vmem:[%s45_s26] sm:$0x1]  ;;  %s317_s22 = smov (!%p51_p0, %s145_s22), 0  ;;  %p61_p2 = scmp.gt.s32.totalorder %s151_s23, 0 }
  0x2a   :  { %48 = vst [vmem:[#allocation7 + $0x1] sm:$0x1] %v46_v1  ;;  %p152_p3 = scmp.lt.s32.totalorder %s151_s23, 15  ;;  %s319_s22 = smov (!%p146_p1, %s317_s22), 15 }
  0x2b   :  { %s321_s23 = smov (!%p61_p2, %s151_s23), 0  ;;  %p71_p4 = scmp.gt.s32.totalorder %s289_s24, 0 }
  0x2c   :  { %s55_s27 = scalar_lea.vmem [#allocation4], %s319_s22  ;;  %s323_s23 = smov (!%p152_p3, %s321_s23), 15 }
  0x2d   :  { %v56_v2 = vld [vmem:[%s55_s27] sm:$0x1]  ;;  %s72_s28 = scalar_select %p71_p4, %s289_s24, 0 }
  0x2e   :  { %58 = vst [vmem:[#allocation7 + $0x2] sm:$0x1] %v56_v2  ;;  %p158_p5 = scmp.lt.s32.totalorder %s289_s24, 15  ;;  %s65_s29 = scalar_lea.vmem [#allocation4], %s323_s23 }
  0x2f   :  { %v66_v3 = vld [vmem:[%s65_s29] sm:$0x1]  ;;  %p81_p6 = scmp.gt.s32.totalorder %s291_s25, 0  ;;  %p164_p7 = scmp.lt.s32.totalorder %s291_s25, 15 }
  0x30   :  { %68 = vst [vmem:[#allocation7 + $0x3] sm:$0x1] %v66_v3  ;;  %s325_s28 = smov (!%p158_p5, %s72_s28), 15  ;;  %s169_s30 = sld [smem:[#allocation3 + $0x6]] }
  0x31   :  { %s327_s25 = smov (!%p81_p6, %s291_s25), 0  ;;  %s75_s3 = scalar_lea.vmem [#allocation4], %s325_s28 }
  0x32   :  { %v76_v4 = vld [vmem:[%s75_s3] sm:$0x1]  ;;  %s329_s25 = smov (!%p164_p7, %s327_s25), 15  ;;  %s175_s4 = sld [smem:[#allocation3 + $0x7]] }
  0x33   :  { %78 = vst [vmem:[#allocation7 + $0x4] sm:$0x1] %v76_v4  ;;  %s85_s5 = scalar_lea.vmem [#allocation4], %s329_s25  ;;  %p235_p12 = scmp.ne.s32.totalorder %s115_s7, %s234_s10 }
  0x34   :  { %v86_v5 = vld [vmem:[%s85_s5] sm:$0x1]  ;;  %p239_p13 = scmp.lt.s32.totalorder %s115_s7, %s115_s7  ;;  %p240_p0 = scmp.lt.s32.totalorder %s234_s10, %s234_s10 }
  0x35   :  { %88 = vst [vmem:[#allocation7 + $0x5] sm:$0x1] %v86_v5 }
  0x36   :  { %p91_p8 = scmp.gt.s32.totalorder %s169_s30, 0  ;;  %p170_p9 = scmp.lt.s32.totalorder %s169_s30, 15 }
  0x37   :  { %p241_p1 = por %p240_p0, %p239_p13 }
  0x38   :  { %s331_s30 = smov (!%p91_p8, %s169_s30), 0  ;;  %p101_p10 = scmp.gt.s32.totalorder %s175_s4, 0 }
  0x39   :  { %p176_p11 = scmp.lt.s32.totalorder %s175_s4, 15  ;;  %s333_s30 = smov (!%p170_p9, %s331_s30), 15 }
  0x3a   :  { %s335_s4 = smov (!%p101_p10, %s175_s4), 0  ;;  %s95_s8 = scalar_lea.vmem [#allocation4], %s333_s30 }
  0x3b   :  { %v96_v6 = vld [vmem:[%s95_s8] sm:$0x1]  ;;  %s337_s4 = smov (!%p176_p11, %s335_s4), 15  ;;  %p242_p2 = pnand %p241_p1, %p235_p12 }
  0x3c   :  { %98 = vst [vmem:[#allocation7 + $0x6] sm:$0x1] %v96_v6  ;;  %s105_s9 = scalar_lea.vmem [#allocation4], %s337_s4 }
  0x3d   :  { %v106_v7 = vld [vmem:[%s105_s9] sm:$0x1] }
  0x3e   :  { %108 = vst [vmem:[#allocation7 + $0x7] sm:$0x1] %v106_v7 }
  0x3f   :  { %245 = shalt.err (!%p242_p2)
}
  0x40   :  { %120 = dma.vmem_to_hbm [thread:$0]  %s115_s7, 128, %s307_s2, [#allocation6], %s262_s0, %s262_s0, %s263_s17  }
  0x41   :  { %258 = dma.done.wait [#allocation6], 128  }
  0x42   :  { %259 = vsyncadd [#allocation6], 4294967168 }
  0x43   :  { %124 = vsyncpa [#allocation5], 1 }
  0x44   :  { %125 = vsyncpa [#allocation6], 1 }

</bundles_post_ra>
